<compile_context>
chip_gen: v6e
topology: v6e:2x2x1
jax: 0.10.0
libtpu: 0.0.40
codegen_flags: <defaults>
</compile_context>

<pallas_src>
import jax
import jax.numpy as jnp
from jax import lax
from jax.experimental import pallas as pl
from jax.experimental.pallas import tpu as pltpu

LANE = 128          # lanes per vreg
CHUNK_ROWS = 64     # sublane chunk inside a block: 8 int32 vregs live per array
MISS = -1           # Python int sentinel (NOT a jnp constant -> nothing captured)


def _map_id_kernel(keys_ref, vals_ref, raw_ref, out_ref):
    # keys_ref / vals_ref: (K,) int32 in SMEM (scalar-prefetched).
    # raw_ref / out_ref:   (tile_rows, 128) int32 blocks in VMEM.
    k = keys_ref.shape[0]                 # static
    block_rows = raw_ref.shape[0]         # static
    chunk = min(CHUNK_ROWS, block_rows)   # divides block_rows (pow2 tiles)
    n_chunks = block_rows // chunk
    key_unroll = True if k <= 64 else 8   # partial unroll for large K

    def lookup(raw):
        def key_body(j, acc):
            # Scalar SMEM reads broadcast against the lane-dense chunk: VPU-only.
            return jnp.where(raw == keys_ref[j], vals_ref[j], acc)
        acc0 = jnp.full(raw.shape, MISS, dtype=jnp.int32)
        return lax.fori_loop(0, k, key_body, acc0, unroll=key_unroll)

    if n_chunks == 1:
        out_ref[...] = lookup(raw_ref[...])
    else:
        def chunk_body(c, carry):
            r0 = pl.multiple_of(c * chunk, chunk)
            out_ref[pl.ds(r0, chunk), :] = lookup(raw_ref[pl.ds(r0, chunk), :])
            return carry
        # fori_loop (not a Python for) bounds live ranges to one chunk.
        lax.fori_loop(0, n_chunks, chunk_body, 0, unroll=False)


def explicit_map_id_list(raw_values: jax.Array, keys: jax.Array,
                         values: jax.Array) -> jax.Array:
    """Vectorized dict lookup: out[i] = values[j] where keys[j] == raw_values[i]."""
    n = raw_values.shape[0]
    raw_i = raw_values.astype(jnp.int32)
    keys_i = keys.astype(jnp.int32)
    vals_i = values.astype(jnp.int32)

    # Lane-dense layout: (rows, 128). Pad only to the 128-lane boundary, and
    # only when misaligned — no padding to the block size (Pallas masks the
    # ragged last grid block), so no extra full HBM passes over N.
    rows = max(1, pl.cdiv(n, LANE))
    n_lane = rows * LANE
    if n_lane != n:
        raw_i = jnp.pad(raw_i, (0, n_lane - n))
    raw2d = raw_i.reshape(rows, LANE)

    # Block sizing: target ~0.5 MiB int32 blocks (1024 x 128); shrink (powers
    # of two, >= 8 rows) so large inputs keep >= 8 grid steps for v7x's two
    # TensorCores; tiny inputs (<= 8 rows) use one full-array block.
    if rows <= 8:
        tile_rows = rows
    else:
        tile_rows = 1024
        while tile_rows > 8 and (tile_rows > rows or
                                 (tile_rows > 64 and rows // tile_rows < 8)):
            tile_rows //= 2

    grid = (pl.cdiv(rows, tile_rows),)

    out = pl.pallas_call(
        _map_id_kernel,
        out_shape=jax.ShapeDtypeStruct((rows, LANE), jnp.int32),
        grid_spec=pltpu.PrefetchScalarGridSpec(
            num_scalar_prefetch=2,
            grid=grid,
            in_specs=[
                pl.BlockSpec((tile_rows, LANE), lambda i, keys, vals: (i, 0)),
            ],
            out_specs=pl.BlockSpec((tile_rows, LANE), lambda i, keys, vals: (i, 0)),
        ),
        compiler_params=pltpu.CompilerParams(
            dimension_semantics=("parallel",)),
    )(keys_i, vals_i, raw2d)

    flat = out.reshape(-1)
    return flat if n_lane == n else flat[:n]


if __name__ == "__main__":
    # Deterministic "id2index" dict built in-script (synthetic, no checkpoint).
    id2index = {10: 0, 20: 1, 30: 2, 42: 3, 7: 4, 999: 5, 5: 6, 1000: 7}
    keys = jnp.array(list(id2index.keys()), dtype=jnp.int32)
    values = jnp.array(list(id2index.values()), dtype=jnp.int32)

    # raw_values: seq of 8 ids sampled deterministically from the dict keys.
    rng = jax.random.PRNGKey(0)
    sel = jax.random.randint(rng, (8,), minval=0, maxval=keys.shape[0])
    raw_values = keys[sel]

    out = jax.block_until_ready(explicit_map_id_list(raw_values, keys, values))

    # Reference check against the plain Python dict lookup.
    expected = jnp.array([id2index[int(x)] for x in raw_values], dtype=jnp.int32)
    assert out.shape == (8,)
    assert out.dtype == jnp.int32
    assert bool(jnp.all(out == expected))

    print("KERNEL_OK")
</pallas_src>

<mosaic_0001>
module attributes {stable_mosaic.version = 11 : i64} {
  func.func @_map_id_kernel(%arg0: i32, %arg1: memref<8xi32, #tpu.memory_space<smem>>, %arg2: memref<8xi32, #tpu.memory_space<smem>>, %arg3: memref<1x128xi32, #tpu.memory_space<vmem>>, %arg4: memref<1x128xi32, #tpu.memory_space<vmem>>) attributes {dimension_semantics = [#tpu.dimension_semantics<parallel>], iteration_bounds = array<i64: 1>, scalar_prefetch = 2 : i64, scratch_operands = 0 : i64, tpu.core_type = #tpu.core_type<tc>, window_params = [{transform_indices = @transform_0, window_bounds = array<i64: 1, 128>}, {transform_indices = @transform_1, window_bounds = array<i64: 1, 128>}]} {
    %c0 = arith.constant 0 : index
    %c0_0 = arith.constant 0 : index
    %0 = vector.load %arg3[%c0, %c0_0] : memref<1x128xi32, #tpu.memory_space<vmem>>, vector<1x128xi32>
    %c-1_i32 = arith.constant -1 : i32
    %1 = vector.broadcast %c-1_i32 : i32 to vector<1x128xi32>
    %c0_i32 = arith.constant 0 : i32
    %2 = arith.index_cast %c0_i32 : i32 to index
    %3 = memref.load %arg1[%2] : memref<8xi32, #tpu.memory_space<smem>>
    %4 = vector.broadcast %3 : i32 to vector<1x128xi32>
    %5 = arith.cmpi eq, %0, %4 : vector<1x128xi32>
    %6 = arith.index_cast %c0_i32 : i32 to index
    %7 = memref.load %arg2[%6] : memref<8xi32, #tpu.memory_space<smem>>
    %8 = vector.broadcast %7 : i32 to vector<1x128xi32>
    %9 = arith.select %5, %8, %1 : vector<1x128xi1>, vector<1x128xi32>
    %c1_i32 = arith.constant 1 : i32
    %10 = arith.index_cast %c1_i32 : i32 to index
    %11 = memref.load %arg1[%10] : memref<8xi32, #tpu.memory_space<smem>>
    %12 = vector.broadcast %11 : i32 to vector<1x128xi32>
    %13 = arith.cmpi eq, %0, %12 : vector<1x128xi32>
    %14 = arith.index_cast %c1_i32 : i32 to index
    %15 = memref.load %arg2[%14] : memref<8xi32, #tpu.memory_space<smem>>
    %16 = vector.broadcast %15 : i32 to vector<1x128xi32>
    %17 = arith.select %13, %16, %9 : vector<1x128xi1>, vector<1x128xi32>
    %c2_i32 = arith.constant 2 : i32
    %18 = arith.index_cast %c2_i32 : i32 to index
    %19 = memref.load %arg1[%18] : memref<8xi32, #tpu.memory_space<smem>>
    %20 = vector.broadcast %19 : i32 to vector<1x128xi32>
    %21 = arith.cmpi eq, %0, %20 : vector<1x128xi32>
    %22 = arith.index_cast %c2_i32 : i32 to index
    %23 = memref.load %arg2[%22] : memref<8xi32, #tpu.memory_space<smem>>
    %24 = vector.broadcast %23 : i32 to vector<1x128xi32>
    %25 = arith.select %21, %24, %17 : vector<1x128xi1>, vector<1x128xi32>
    %c3_i32 = arith.constant 3 : i32
    %26 = arith.index_cast %c3_i32 : i32 to index
    %27 = memref.load %arg1[%26] : memref<8xi32, #tpu.memory_space<smem>>
    %28 = vector.broadcast %27 : i32 to vector<1x128xi32>
    %29 = arith.cmpi eq, %0, %28 : vector<1x128xi32>
    %30 = arith.index_cast %c3_i32 : i32 to index
    %31 = memref.load %arg2[%30] : memref<8xi32, #tpu.memory_space<smem>>
    %32 = vector.broadcast %31 : i32 to vector<1x128xi32>
    %33 = arith.select %29, %32, %25 : vector<1x128xi1>, vector<1x128xi32>
    %c4_i32 = arith.constant 4 : i32
    %34 = arith.index_cast %c4_i32 : i32 to index
    %35 = memref.load %arg1[%34] : memref<8xi32, #tpu.memory_space<smem>>
    %36 = vector.broadcast %35 : i32 to vector<1x128xi32>
    %37 = arith.cmpi eq, %0, %36 : vector<1x128xi32>
    %38 = arith.index_cast %c4_i32 : i32 to index
    %39 = memref.load %arg2[%38] : memref<8xi32, #tpu.memory_space<smem>>
    %40 = vector.broadcast %39 : i32 to vector<1x128xi32>
    %41 = arith.select %37, %40, %33 : vector<1x128xi1>, vector<1x128xi32>
    %c5_i32 = arith.constant 5 : i32
    %42 = arith.index_cast %c5_i32 : i32 to index
    %43 = memref.load %arg1[%42] : memref<8xi32, #tpu.memory_space<smem>>
    %44 = vector.broadcast %43 : i32 to vector<1x128xi32>
    %45 = arith.cmpi eq, %0, %44 : vector<1x128xi32>
    %46 = arith.index_cast %c5_i32 : i32 to index
    %47 = memref.load %arg2[%46] : memref<8xi32, #tpu.memory_space<smem>>
    %48 = vector.broadcast %47 : i32 to vector<1x128xi32>
    %49 = arith.select %45, %48, %41 : vector<1x128xi1>, vector<1x128xi32>
    %c6_i32 = arith.constant 6 : i32
    %50 = arith.index_cast %c6_i32 : i32 to index
    %51 = memref.load %arg1[%50] : memref<8xi32, #tpu.memory_space<smem>>
    %52 = vector.broadcast %51 : i32 to vector<1x128xi32>
    %53 = arith.cmpi eq, %0, %52 : vector<1x128xi32>
    %54 = arith.index_cast %c6_i32 : i32 to index
    %55 = memref.load %arg2[%54] : memref<8xi32, #tpu.memory_space<smem>>
    %56 = vector.broadcast %55 : i32 to vector<1x128xi32>
    %57 = arith.select %53, %56, %49 : vector<1x128xi1>, vector<1x128xi32>
    %c7_i32 = arith.constant 7 : i32
    %58 = arith.index_cast %c7_i32 : i32 to index
    %59 = memref.load %arg1[%58] : memref<8xi32, #tpu.memory_space<smem>>
    %60 = vector.broadcast %59 : i32 to vector<1x128xi32>
    %61 = arith.cmpi eq, %0, %60 : vector<1x128xi32>
    %62 = arith.index_cast %c7_i32 : i32 to index
    %63 = memref.load %arg2[%62] : memref<8xi32, #tpu.memory_space<smem>>
    %64 = vector.broadcast %63 : i32 to vector<1x128xi32>
    %65 = arith.select %61, %64, %57 : vector<1x128xi1>, vector<1x128xi32>
    %c8_i32 = arith.constant 8 : i32
    %c0_1 = arith.constant 0 : index
    %c0_2 = arith.constant 0 : index
    %66 = vector.load %arg4[%c0_1, %c0_2] : memref<1x128xi32, #tpu.memory_space<vmem>>, vector<1x128xi32>
    tpu.vector_store %arg4[%c0_1, %c0_2], %65 {strides = array<i32>} : memref<1x128xi32, #tpu.memory_space<vmem>>, vector<1x128xi32>,
    return
  }
  func.func @transform_0(%arg0: i32, %arg1: memref<8xi32, #tpu.memory_space<smem>>, %arg2: memref<8xi32, #tpu.memory_space<smem>>) -> (i32, i32) {
    %c0_i32 = arith.constant 0 : i32
    %c0_i32_0 = arith.constant 0 : i32
    return %arg0, %c0_i32 : i32, i32
  }
  func.func @transform_1(%arg0: i32, %arg1: memref<8xi32, #tpu.memory_space<smem>>, %arg2: memref<8xi32, #tpu.memory_space<smem>>) -> (i32, i32) {
    %c0_i32 = arith.constant 0 : i32
    %c0_i32_0 = arith.constant 0 : i32
    return %arg0, %c0_i32 : i32, i32
  }
}

</mosaic_0001>

<bundles_post_ra>
// kernel: tpu_custom_call.1
= control target key start
LH: loop header
LB: loop body
LE: loop exit
PB: predicated region body
PF: predicated region fallthrough
CT: control target
= control target key end

     0   :  { %s144_s12 = smov [#allocation3]   ;;  %s179_s0 = inlined_call_operand.hbm [shape: s32[8], index: 0, kind: input, shape index: {}]   ;;  %s180_s2 = inlined_call_operand.vmem [shape: s32[1,128], index: 2, kind: input, shape index: {}]   ;;  %s181_s3 = inlined_call_operand.hbm [shape: s32[1,128], index: 3, kind: output, shape index: {}]   ;;  %s182_s1 = inlined_call_operand.vmem [shape: s32[8], index: 1, kind: input, shape index: {}]  }
   0x1   :  { %9 = dma.hbm_to_smem %s179_s0, 16, %s144_s12, [#allocation2] }
   0x2   :  { %s10_s17 = sshll.u32 %s182_s1, 4  ;;  %s11_s17 = int_to_ptr.vmem [resolvable:$true] %s10_s17 }
   0x3   :  { %s108_s18 = scalar_lea.vmem %s11_s17, 16  ;;  %p113_p1 = scmp.lt.s32.totalorder %s11_s17, %s11_s17 }
   0x4   :  { %p109_p0 = scmp.ne.s32.totalorder %s11_s17, %s108_s18  ;;  %p114_p2 = scmp.lt.s32.totalorder %s108_s18, %s108_s18 }
   0x6   :  { %p115_p3 = por %p114_p2, %p113_p1 }
   0x8   :  { %p116_p4 = pnand %p115_p3, %p109_p0 }
   0xa   :  { %119 = shalt.err (!%p116_p4)  }
   0xb   :  { %s145_s19 = smov [#allocation4]  }
   0xc   :  { %13 = dma.vmem_to_smem %s11_s17, 16, %s145_s19, [#allocation2] }
   0xd   :  { %140 = dma.done.wait [#allocation2], 32 }
   0xe   :  { %141 = vsyncadd [#allocation2], 4294967264 }
   0xf   :  { %15 = sfence }
  0x10   :  { %s20_s20 = sld [smem:[#allocation3]] }
  0x11   :  { %16 = vsyncpa [#allocation6], 0  ;;  %s23_s0 = sld [smem:[#allocation4]]  ;;  %v19_v0 = vld [vmem:[%s180_s2] sm:$0x1]  ;;  %s146_s8 = smov [#allocation5]  }
  0x12   :  { %s83_s21 = sld [smem:[#allocation3 + $0x1]]  ;;  %s75_s9 = sshll.u32 %s146_s8, 4  ;;  %s76_s9 = int_to_ptr.vmem [resolvable:$true] %s75_s9 }
  0x13   :  { %s84_s22 = sld [smem:[#allocation4 + $0x1]]  ;;  %s120_s10 = scalar_lea.vmem %s76_s9, 16 }
  0x14   :  { %s85_s24 = sld [smem:[#allocation3 + $0x2]]  ;;  %p121_p5 = scmp.ne.s32.totalorder %s76_s9, %s120_s10 }
  0x15   :  { %s86_s25 = sld [smem:[#allocation4 + $0x2]]  ;;  %s124_s11 = scalar_lea.vmem %s76_s9, 32 }
  0x16   :  { %v21_v1 = vstv %s20_s20  ;;  %s87_s26 = sld [smem:[#allocation3 + $0x3]]  ;;  %p125_p6 = scmp.lt.s32.totalorder %s76_s9, %s76_s9 }
  0x17   :  { %vm22_vm0 = vcmp.eq.s32.totalorder %v19_v0, %v21_v1  ;;  %v24_v2 = vstv %s23_s0  ;;  %s88_s27 = sld [smem:[#allocation4 + $0x3]]  ;;  %p126_p7 = scmp.lt.s32.totalorder %s124_s11, %s120_s10 }
  0x18   :  { %v25_v3 = vsel %vm22_vm0, %v24_v2, 4294967295  ;;  %v27_v4 = vstv %s83_s21  ;;  %s89_s28 = sld [smem:[#allocation3 + $0x4]] }
  0x19   :  { %vm28_vm1 = vcmp.eq.s32.totalorder %v19_v0, %v27_v4  ;;  %v30_v5 = vstv %s84_s22  ;;  %s90_s29 = sld [smem:[#allocation4 + $0x4]]  ;;  %p127_p8 = por %p126_p7, %p125_p6 }
  0x1a   :  { %v31_v6 = vsel %vm28_vm1, %v30_v5, %v25_v3  ;;  %v33_v7 = vstv %s85_s24  ;;  %s91_s30 = sld [smem:[#allocation3 + $0x5]] }
  0x1b   :  { %vm34_vm2 = vcmp.eq.s32.totalorder %v19_v0, %v33_v7  ;;  %v36_v8 = vstv %s86_s25  ;;  %s92_s4 = sld [smem:[#allocation4 + $0x5]]  ;;  %p128_p9 = pnand %p127_p8, %p121_p5 }
  0x1c   :  { %v37_v9 = vsel %vm34_vm2, %v36_v8, %v31_v6  ;;  %v39_v10 = vstv %s87_s26  ;;  %s93_s2 = sld [smem:[#allocation3 + $0x6]] }
  0x1d   :  { %vm40_vm3 = vcmp.eq.s32.totalorder %v19_v0, %v39_v10  ;;  %v42_v11 = vstv %s88_s27  ;;  %s94_s5 = sld [smem:[#allocation4 + $0x6]] }
  0x1e   :  { %v43_v12 = vsel %vm40_vm3, %v42_v11, %v37_v9  ;;  %v45_v13 = vstv %s89_s28  ;;  %s95_s6 = sld [smem:[#allocation3 + $0x7]] }
  0x1f   :  { %vm46_vm4 = vcmp.eq.s32.totalorder %v19_v0, %v45_v13  ;;  %v48_v14 = vstv %s90_s29  ;;  %s96_s7 = sld [smem:[#allocation4 + $0x7]] }
  0x20   :  { %v49_v15 = vsel %vm46_vm4, %v48_v14, %v43_v12  ;;  %v51_v16 = vstv %s91_s30 }
  0x21   :  { %vm52_vm5 = vcmp.eq.s32.totalorder %v19_v0, %v51_v16  ;;  %v54_v17 = vstv %s92_s4 }
  0x22   :  { %v55_v18 = vsel %vm52_vm5, %v54_v17, %v49_v15  ;;  %v57_v19 = vstv %s93_s2 }
  0x23   :  { %vm58_vm6 = vcmp.eq.s32.totalorder %v19_v0, %v57_v19  ;;  %v60_v20 = vstv %s94_s5 }
  0x24   :  { %v61_v21 = vsel %vm58_vm6, %v60_v20, %v55_v18  ;;  %v63_v22 = vstv %s95_s6 }
  0x25   :  { %vm64_vm7 = vcmp.eq.s32.totalorder %v19_v0, %v63_v22  ;;  %v66_v23 = vstv %s96_s7 }
  0x26   :  { %v67_v24 = vsel %vm64_vm7, %v66_v23, %v61_v21 }
  0x27   :  { %68 = vst [vmem:[#allocation5] sm:$0x1] %v67_v24 }
  0x28   :  { %131 = shalt.err (!%p128_p9)
}
  0x29   :  { %78 = dma.vmem_to_hbm [thread:$0]  %s76_s9, 16, %s181_s3, [#allocation6]  }
  0x2a   :  { %142 = dma.done.wait [#allocation6], 16  }
  0x2b   :  { %143 = vsyncadd [#allocation6], 4294967280 }
  0x2c   :  { %82 = vsyncpa [#allocation6], 1 }

</bundles_post_ra>
